<compile_context>
chip_gen: v7x
topology: tpu7x:2x2x1
jax: 0.10.0
libtpu: 0.0.40
codegen_flags: <defaults>
</compile_context>

<pallas_src>
import math
import functools
import jax
import jax.numpy as jnp
from jax.experimental import pallas as pl
from jax.experimental.pallas import tpu as pltpu

LOG_2PI = math.log(2.0 * math.pi)
DELTA = 1e-10


def _make_kernel(tile_v, n_vt, v_total, cache_pdf):
    inv_denom = 1.0 / (1.0 + DELTA * float(v_total))
    delta_term = DELTA * inv_denom

    def kernel(mu_ref, logsig_ref, doc_ref, eps_ref,
               thw_t_ref, thb_ref, mu_mat_ref, logsig2_ref, w_ref,
               re_ref, theta_ref, beta_ref,
               lhs_a_sc, lhs_b_sc, const_sc, m_sc, l_sc, pdf_sc):
        p = pl.program_id(0)          # 0: softmax-statistics pass, 1: finalize pass
        j = pl.program_id(1)          # vocab tile index
        K, E = mu_mat_ref.shape

        # ---------------- one-time setup (very first grid step) ----------------
        @pl.when(jnp.logical_and(p == 0, j == 0))
        def _():
            logsig2 = logsig2_ref[...]                    # [K, E]
            mu_mat = mu_mat_ref[...]                      # [K, E]
            inv_sig = jnp.exp(-logsig2)
            # pdf[k, v] = lhs_a[k,:] @ (w*w)[:,v] + lhs_b[k,:] @ w[:,v] + const[k]
            lhs_a_sc[...] = -0.5 * inv_sig
            lhs_b_sc[...] = mu_mat * inv_sig
            const_sc[...] = -0.5 * (
                E * LOG_2PI
                + jnp.sum(logsig2, axis=1, keepdims=True)
                + jnp.sum(mu_mat * mu_mat * inv_sig, axis=1, keepdims=True))
            m_sc[...] = jnp.full(m_sc.shape, -jnp.inf, dtype=m_sc.dtype)  # running max
            l_sc[...] = jnp.zeros(l_sc.shape, dtype=l_sc.dtype)           # running sum(exp)
            re_ref[...] = jnp.zeros(re_ref.shape, dtype=re_ref.dtype)

            # theta = Softmax(dim=0)(Linear(K,K)(z)) — independent of V, once.
            z = eps_ref[...] * jnp.exp(logsig_ref[...]) + mu_ref[...]     # [B, K]
            pre = jnp.dot(z, thw_t_ref[...],
                          preferred_element_type=jnp.float32) + thb_ref[...]
            pre = pre - jnp.max(pre, axis=0, keepdims=True)
            pe = jnp.exp(pre)
            theta_ref[...] = pe / jnp.sum(pe, axis=0, keepdims=True)

        def compute_pdf():
            w = w_ref[...]                                # [E, tile_v]
            return (jnp.dot(lhs_a_sc[...], w * w, preferred_element_type=jnp.float32)
                    + jnp.dot(lhs_b_sc[...], w, preferred_element_type=jnp.float32)
                    + const_sc[...])                      # [K, tile_v]

        # ---------------- pass 0: online softmax statistics over V --------------
        @pl.when(p == 0)
        def _():
            pdf = compute_pdf()
            pdf_sc[j if cache_pdf else 0] = pdf           # cache for the finalize pass
            m_new = jnp.maximum(m_sc[...], jnp.max(pdf, axis=1, keepdims=True))
            l_sc[...] = (l_sc[...] * jnp.exp(m_sc[...] - m_new)
                         + jnp.sum(jnp.exp(pdf - m_new), axis=1, keepdims=True))
            m_sc[...] = m_new

        # fold 1/l and 1/(1 + DELTA*V) into one per-row scale, once per pass 1.
        @pl.when(jnp.logical_and(p == 1, j == 0))
        def _():
            l_sc[...] = pl.reciprocal(l_sc[...], approx=True) * inv_denom

        # ---------------- pass 1: beta tile + Re accumulation -------------------
        @pl.when(p == 1)
        def _():
            pdf = pdf_sc[j] if cache_pdf else compute_pdf()
            # softmax rows sum to (numerically) 1 -> denominator folded into l_sc.
            beta_t = jnp.exp(pdf - m_sc[...]) * l_sc[...] + delta_term   # [K, tile_v]
            # NOTE: beta's block index stays at (0,0) through pass 0 and is only
            # written back after this pass-1 write (block index change / grid end).
            beta_ref[...] = beta_t

            mix = jnp.dot(theta_ref[...], beta_t,
                          preferred_element_type=jnp.float32)            # [B, tile_v]
            contrib = jnp.log(mix + 1e-10) * doc_ref[...]                # [B, tile_v]
            n_ch = tile_v // 128
            if n_ch == 1:
                re_ref[...] += contrib
            else:
                # lane-preserving reshape + axis-sum (no serial 32-deep add chain)
                re_ref[...] += contrib.reshape(contrib.shape[0], n_ch, 128).sum(axis=1)

    return kernel


def generative_forward(mu, logsig, doc_bow, eps,
                       theta_w, theta_b, mu_mat, log_sigma2_mat, word_emb,
                       *, tile_v=4096, cache_pdf=None):
    B, K = mu.shape
    V, E = word_emb.shape
    tile_v = min(tile_v, V)
    assert tile_v % 128 == 0 and V % tile_v == 0, "V and tile_v must be multiples of 128"
    n_vt = V // tile_v

    f32 = jnp.float32
    # Wrapper-side layout plumbing (frozen GloVe data): embeddings pre-transposed
    # to [E, V] (lane-dense over V); theta_linear weight pre-transposed once.
    w_t = word_emb.astype(f32).T                       # [E, V]
    thw_t = theta_w.astype(f32).T                      # [K, K]

    # --- VMEM budget: cache the [K, V] log-pdf unless it would not fit (v7x) ---
    stream_bytes = 4 * (2 * E * tile_v + 2 * B * tile_v + 2 * K * tile_v
                        + B * 128 + B * K)
    cache_bytes = 4 * K * V
    if cache_pdf is None:
        cache_pdf = (stream_bytes + cache_bytes) < (40 << 20)   # safe on 64 MiB v7x
    pdf_slots = n_vt if cache_pdf else 1
    vmem_limit = max(32 << 20,
                     min(96 << 20,
                         stream_bytes + 4 * pdf_slots * K * tile_v + (8 << 20)))

    const00 = lambda p, j: (0, 0)
    if cache_pdf:
        # pass 1 never re-streams the embeddings: pin the block index so no DMA
        w_map = lambda p, j: (0, j * (1 - p) + (n_vt - 1) * p)
    else:
        w_map = lambda p, j: (0, j)

    grid_spec = pltpu.PrefetchScalarGridSpec(
        num_scalar_prefetch=0,
        grid=(2, n_vt),                                # (pass, vocab tile)
        in_specs=[
            pl.BlockSpec((B, K), const00),                           # mu
            pl.BlockSpec((B, K), const00),                           # logsig
            pl.BlockSpec((B, tile_v), lambda p, j: (0, j * p)),      # doc_bow (pass 1 only)
            pl.BlockSpec((1, K), const00),                           # eps
            pl.BlockSpec((K, K), const00),                           # theta weight^T
            pl.BlockSpec((1, K), const00),                           # theta bias
            pl.BlockSpec((K, E), const00),                           # mu_mat
            pl.BlockSpec((K, E), const00),                           # log_sigma2_mat
            pl.BlockSpec((E, tile_v), w_map),                        # word embeddings^T
        ],
        out_specs=[
            pl.BlockSpec((B, 128), const00),                         # Re lane-partials
            pl.BlockSpec((B, K), const00),                           # theta
            pl.BlockSpec((K, tile_v), lambda p, j: (0, j * p)),      # beta (pass 1)
        ],
        scratch_shapes=[
            pltpu.VMEM((K, E), f32),                 # -0.5 / sigma^2
            pltpu.VMEM((K, E), f32),                 # mu / sigma^2
            pltpu.VMEM((K, 1), f32),                 # per-row additive constant
            pltpu.VMEM((K, 1), f32),                 # running row max
            pltpu.VMEM((K, 1), f32),                 # running row sum(exp) / scale
            pltpu.VMEM((pdf_slots, K, tile_v), f32), # cached per-tile log-pdf
        ],
    )

    out_shape = (
        jax.ShapeDtypeStruct((B, 128), f32),   # lane-partial Re sums
        jax.ShapeDtypeStruct((B, K), f32),     # theta
        jax.ShapeDtypeStruct((K, V), f32),     # beta
    )

    emb_passes = 1 if cache_pdf else 2
    cost = pl.CostEstimate(
        flops=int(emb_passes * 2 * K * (2 * E) * V + 2 * B * K * V),
        transcendentals=int(2 * K * V + B * V),
        bytes_accessed=int(4 * (emb_passes * E * V + B * V + K * V + B * K)),
    )

    kernel = _make_kernel(tile_v, n_vt, V, cache_pdf)

    re_lanes, theta, beta = pl.pallas_call(
        kernel,
        out_shape=out_shape,
        grid_spec=grid_spec,
        cost_estimate=cost,
        compiler_params=pltpu.CompilerParams(
            # both axes carry sequential state (online softmax + Re accumulation)
            dimension_semantics=("arbitrary", "arbitrary"),
            vmem_limit_bytes=int(vmem_limit),
        ),
    )(mu.astype(f32), logsig.astype(f32), doc_bow.astype(f32), eps.astype(f32),
      thw_t, theta_b.astype(f32), mu_mat.astype(f32),
      log_sigma2_mat.astype(f32), w_t)

    Re = -jnp.sum(re_lanes, axis=1)
    return Re, theta, beta


if __name__ == "__main__":
    B, K, V, E = 2, 8, 256, 32   # batch, n_topics, vocabulary_size, topic_embeddings_size

    key = jax.random.PRNGKey(0)
    ks = jax.random.split(key, 9)

    # --- parameters (__init__ zero-inits theta_linear; small non-zero values are
    #     used here so the linear + softmax path is actually exercised) ---
    theta_w = 0.1 * jax.random.normal(ks[0], (K, K), jnp.float32)
    theta_b = 0.1 * jax.random.normal(ks[1], (1, K), jnp.float32)
    xn_std = math.sqrt(2.0 / (K + E))                   # xavier_normal_, gain=1
    mu_mat = xn_std * jax.random.normal(ks[2], (K, E), jnp.float32)
    log_sigma2_mat = xn_std * jax.random.normal(ks[3], (K, E), jnp.float32)
    word_emb = 0.1 * jax.random.normal(ks[4], (V, E), jnp.float32)   # GloVe stand-in
    # NOTE: topic_embeddings_mat is registered in __init__ but never used in forward.

    # --- inputs ---
    mu = jax.random.normal(ks[5], (B, K), jnp.float32)
    logsig = 0.1 * jax.random.normal(ks[6], (B, K), jnp.float32)
    doc_bow = jax.random.randint(ks[7], (B, V), 0, 5).astype(jnp.float32)
    eps = jax.random.normal(ks[8], (1, K), jnp.float32)   # reparameterization noise
    # TODO(synk): torch.normal noise is drawn on the host in the reference; it is
    # passed in as an input here (no in-kernel RNG needed for the forward pass).

    run = functools.partial(generative_forward, mu, logsig, doc_bow, eps,
                            theta_w, theta_b, mu_mat, log_sigma2_mat, word_emb,
                            tile_v=128)   # 2 vocab tiles -> exercises the tiling path
    Re, theta, beta = run()                       # pdf-cache path (default)
    Re2, theta2, beta2 = run(cache_pdf=False)     # two-pass streaming fallback (v7x)
    jax.block_until_ready((Re, theta, beta, Re2, theta2, beta2))

    # --- pure-JAX reference (mirrors the PyTorch forward) ---
    hi = jax.lax.Precision.HIGHEST
    z = eps * jnp.exp(logsig) + mu
    pre = jnp.dot(z, theta_w.T, precision=hi) + theta_b
    theta_want = jax.nn.softmax(pre, axis=0)
    diff = word_emb[None, :, :] - mu_mat[:, None, :]                     # [K, V, E]
    pdf = -0.5 * jnp.sum(LOG_2PI + log_sigma2_mat[:, None, :]
                         + diff * diff / jnp.exp(log_sigma2_mat[:, None, :]), axis=2)
    beta_ori = jax.nn.softmax(pdf, axis=1)
    beta_want = (beta_ori + DELTA) / (jnp.sum(beta_ori, axis=1, keepdims=True) + DELTA * V)
    Re_want = -jnp.sum(jnp.log(jnp.dot(theta_want, beta_want, precision=hi) + 1e-10)
                       * doc_bow, axis=1)

    for r, t, b in ((Re, theta, beta), (Re2, theta2, beta2)):
        assert r.shape == (B,) and t.shape == (B, K) and b.shape == (K, V)
        assert bool(jnp.all(jnp.isfinite(r))) and bool(jnp.all(jnp.isfinite(b)))
        assert bool(jnp.allclose(t, theta_want, rtol=1e-2, atol=1e-4))
        assert bool(jnp.allclose(b, beta_want, rtol=1e-2, atol=1e-5))
        assert bool(jnp.allclose(r, Re_want, rtol=1e-2, atol=1e-1))
    print("KERNEL_OK")
</pallas_src>

<mosaic_0001>
module attributes {stable_mosaic.version = 11 : i64} {
  func.func @kernel(%arg0: i32, %arg1: i32, %arg2: memref<2x8xf32, #tpu.memory_space<vmem>>, %arg3: memref<2x8xf32, #tpu.memory_space<vmem>>, %arg4: memref<2x128xf32, #tpu.memory_space<vmem>>, %arg5: memref<1x8xf32, #tpu.memory_space<vmem>>, %arg6: memref<8x8xf32, #tpu.memory_space<vmem>>, %arg7: memref<1x8xf32, #tpu.memory_space<vmem>>, %arg8: memref<8x32xf32, #tpu.memory_space<vmem>>, %arg9: memref<8x32xf32, #tpu.memory_space<vmem>>, %arg10: memref<32x128xf32, #tpu.memory_space<vmem>>, %arg11: memref<2x128xf32, #tpu.memory_space<vmem>>, %arg12: memref<2x8xf32, #tpu.memory_space<vmem>>, %arg13: memref<8x128xf32, #tpu.memory_space<vmem>>, %arg14: memref<8x32xf32, #tpu.memory_space<vmem>>, %arg15: memref<8x32xf32, #tpu.memory_space<vmem>>, %arg16: memref<8x1xf32, #tpu.memory_space<vmem>>, %arg17: memref<8x1xf32, #tpu.memory_space<vmem>>, %arg18: memref<8x1xf32, #tpu.memory_space<vmem>>, %arg19: memref<2x8x128xf32, #tpu.memory_space<vmem>>) attributes {dimension_semantics = [#tpu.dimension_semantics<arbitrary>, #tpu.dimension_semantics<arbitrary>], iteration_bounds = array<i64: 2, 2>, scalar_prefetch = 0 : i64, scratch_operands = 6 : i64, tpu.core_type = #tpu.core_type<tc>, window_params = [{pipeline_mode = #tpu.pipeline_mode<synchronous>, transform_indices = @transform_0, window_bounds = array<i64: 2, 8>}, {pipeline_mode = #tpu.pipeline_mode<synchronous>, transform_indices = @transform_1, window_bounds = array<i64: 2, 8>}, {transform_indices = @transform_2, window_bounds = array<i64: 2, 128>}, {pipeline_mode = #tpu.pipeline_mode<synchronous>, transform_indices = @transform_3, window_bounds = array<i64: 1, 8>}, {pipeline_mode = #tpu.pipeline_mode<synchronous>, transform_indices = @transform_4, window_bounds = array<i64: 8, 8>}, {pipeline_mode = #tpu.pipeline_mode<synchronous>, transform_indices = @transform_5, window_bounds = array<i64: 1, 8>}, {pipeline_mode = #tpu.pipeline_mode<synchronous>, transform_indices = @transform_6, window_bounds = array<i64: 8, 32>}, {pipeline_mode = #tpu.pipeline_mode<synchronous>, transform_indices = @transform_7, window_bounds = array<i64: 8, 32>}, {transform_indices = @transform_8, window_bounds = array<i64: 32, 128>}, {pipeline_mode = #tpu.pipeline_mode<synchronous>, transform_indices = @transform_9, window_bounds = array<i64: 2, 128>}, {pipeline_mode = #tpu.pipeline_mode<synchronous>, transform_indices = @transform_10, window_bounds = array<i64: 2, 8>}, {transform_indices = @transform_11, window_bounds = array<i64: 8, 128>}]} {
    %c0_i32 = arith.constant 0 : i32
    %0 = arith.cmpi eq, %arg0, %c0_i32 : i32
    %c0_i32_0 = arith.constant 0 : i32
    %1 = arith.cmpi eq, %arg1, %c0_i32_0 : i32
    %2 = arith.andi %0, %1 : i1
    %3 = arith.extui %2 : i1 to i32
    %c0_i32_1 = arith.constant 0 : i32
    %4 = arith.cmpi ne, %3, %c0_i32_1 : i32
    scf.if %4 {
      %c0 = arith.constant 0 : index
      %c0_8 = arith.constant 0 : index
      %16 = vector.load %arg9[%c0, %c0_8] : memref<8x32xf32, #tpu.memory_space<vmem>>, vector<8x32xf32>
      %c0_9 = arith.constant 0 : index
      %c0_10 = arith.constant 0 : index
      %17 = vector.load %arg8[%c0_9, %c0_10] : memref<8x32xf32, #tpu.memory_space<vmem>>, vector<8x32xf32>
      %cst = arith.constant 0.000000e+00 : f32
      %18 = vector.broadcast %cst : f32 to vector<8x32xf32>
      %19 = arith.subf %18, %16 : vector<8x32xf32>
      %20 = math.exp %19 : vector<8x32xf32>
      %cst_11 = arith.constant -5.000000e-01 : f32
      %21 = vector.broadcast %cst_11 : f32 to vector<8x32xf32>
      %22 = arith.mulf %21, %20 : vector<8x32xf32>
      %c0_12 = arith.constant 0 : index
      %c0_13 = arith.constant 0 : index
      %23 = vector.load %arg14[%c0_12, %c0_13] : memref<8x32xf32, #tpu.memory_space<vmem>>, vector<8x32xf32>
      tpu.vector_store %arg14[%c0_12, %c0_13], %22 {strides = array<i32>} : memref<8x32xf32, #tpu.memory_space<vmem>>, vector<8x32xf32>,
      %24 = arith.mulf %17, %20 : vector<8x32xf32>
      %c0_14 = arith.constant 0 : index
      %c0_15 = arith.constant 0 : index
      %25 = vector.load %arg15[%c0_14, %c0_15] : memref<8x32xf32, #tpu.memory_space<vmem>>, vector<8x32xf32>
      tpu.vector_store %arg15[%c0_14, %c0_15], %24 {strides = array<i32>} : memref<8x32xf32, #tpu.memory_space<vmem>>, vector<8x32xf32>,
      %cst_16 = arith.constant dense<0.000000e+00> : vector<8xf32>
      %26 = vector.multi_reduction <add>, %16, %cst_16 [1] : vector<8x32xf32> to vector<8xf32>
      %27 = vector.shape_cast %26 : vector<8xf32> to vector<8x1xf32>
      %cst_17 = arith.constant 58.8120651 : f32
      %28 = vector.broadcast %cst_17 : f32 to vector<8x1xf32>
      %29 = arith.addf %28, %27 : vector<8x1xf32>
      %30 = arith.mulf %17, %17 : vector<8x32xf32>
      %31 = arith.mulf %30, %20 : vector<8x32xf32>
      %cst_18 = arith.constant dense<0.000000e+00> : vector<8xf32>
      %32 = vector.multi_reduction <add>, %31, %cst_18 [1] : vector<8x32xf32> to vector<8xf32>
      %33 = vector.shape_cast %32 : vector<8xf32> to vector<8x1xf32>
      %34 = arith.addf %29, %33 : vector<8x1xf32>
      %cst_19 = arith.constant -5.000000e-01 : f32
      %35 = vector.broadcast %cst_19 : f32 to vector<8x1xf32>
      %36 = arith.mulf %35, %34 : vector<8x1xf32>
      %c0_20 = arith.constant 0 : index
      %c0_21 = arith.constant 0 : index
      %37 = vector.load %arg16[%c0_20, %c0_21] : memref<8x1xf32, #tpu.memory_space<vmem>>, vector<8x1xf32>
      tpu.vector_store %arg16[%c0_20, %c0_21], %36 {strides = array<i32>} : memref<8x1xf32, #tpu.memory_space<vmem>>, vector<8x1xf32>,
      %cst_22 = arith.constant 0xFF800000 : f32
      %38 = vector.broadcast %cst_22 : f32 to vector<8x1xf32>
      %c0_23 = arith.constant 0 : index
      %c0_24 = arith.constant 0 : index
      %39 = vector.load %arg17[%c0_23, %c0_24] : memref<8x1xf32, #tpu.memory_space<vmem>>, vector<8x1xf32>
      tpu.vector_store %arg17[%c0_23, %c0_24], %38 {strides = array<i32>} : memref<8x1xf32, #tpu.memory_space<vmem>>, vector<8x1xf32>,
      %cst_25 = arith.constant 0.000000e+00 : f32
      %40 = vector.broadcast %cst_25 : f32 to vector<8x1xf32>
      %c0_26 = arith.constant 0 : index
      %c0_27 = arith.constant 0 : index
      %41 = vector.load %arg18[%c0_26, %c0_27] : memref<8x1xf32, #tpu.memory_space<vmem>>, vector<8x1xf32>
      tpu.vector_store %arg18[%c0_26, %c0_27], %40 {strides = array<i32>} : memref<8x1xf32, #tpu.memory_space<vmem>>, vector<8x1xf32>,
      %cst_28 = arith.constant 0.000000e+00 : f32
      %42 = vector.broadcast %cst_28 : f32 to vector<2x128xf32>
      %c0_29 = arith.constant 0 : index
      %c0_30 = arith.constant 0 : index
      %43 = vector.load %arg11[%c0_29, %c0_30] : memref<2x128xf32, #tpu.memory_space<vmem>>, vector<2x128xf32>
      tpu.vector_store %arg11[%c0_29, %c0_30], %42 {strides = array<i32>} : memref<2x128xf32, #tpu.memory_space<vmem>>, vector<2x128xf32>,
      %c0_31 = arith.constant 0 : index
      %c0_32 = arith.constant 0 : index
      %44 = vector.load %arg5[%c0_31, %c0_32] : memref<1x8xf32, #tpu.memory_space<vmem>>, vector<1x8xf32>
      %c0_33 = arith.constant 0 : index
      %c0_34 = arith.constant 0 : index
      %45 = vector.load %arg3[%c0_33, %c0_34] : memref<2x8xf32, #tpu.memory_space<vmem>>, vector<2x8xf32>
      %46 = math.exp %45 : vector<2x8xf32>
      %47 = vector.broadcast %44 : vector<1x8xf32> to vector<2x8xf32>
      %48 = arith.mulf %47, %46 : vector<2x8xf32>
      %c0_35 = arith.constant 0 : index
      %c0_36 = arith.constant 0 : index
      %49 = vector.load %arg2[%c0_35, %c0_36] : memref<2x8xf32, #tpu.memory_space<vmem>>, vector<2x8xf32>
      %50 = arith.addf %48, %49 : vector<2x8xf32>
      %c0_37 = arith.constant 0 : index
      %c0_38 = arith.constant 0 : index
      %51 = vector.load %arg6[%c0_37, %c0_38] : memref<8x8xf32, #tpu.memory_space<vmem>>, vector<8x8xf32>
      %cst_39 = arith.constant dense<0.000000e+00> : vector<2x8xf32>
      %52 = tpu.matmul %50, %51, %cst_39 {dimension_numbers = #tpu.dot_dimension_numbers<[1], [0], [0], [1], [0, 0, 1, 1], [], []>} : vector<2x8xf32>, vector<8x8xf32>, vector<2x8xf32> -> vector<2x8xf32>
      %c0_40 = arith.constant 0 : index
      %c0_41 = arith.constant 0 : index
      %53 = vector.load %arg7[%c0_40, %c0_41] : memref<1x8xf32, #tpu.memory_space<vmem>>, vector<1x8xf32>
      %54 = vector.broadcast %53 : vector<1x8xf32> to vector<2x8xf32>
      %55 = arith.addf %52, %54 : vector<2x8xf32>
      %cst_42 = arith.constant dense<0xFF800000> : vector<8xf32>
      %56 = vector.multi_reduction <maximumf>, %55, %cst_42 [0] : vector<2x8xf32> to vector<8xf32>
      %57 = vector.shape_cast %56 : vector<8xf32> to vector<1x8xf32>
      %58 = vector.broadcast %57 : vector<1x8xf32> to vector<2x8xf32>
      %59 = arith.subf %55, %58 : vector<2x8xf32>
      %60 = math.exp %59 : vector<2x8xf32>
      %cst_43 = arith.constant dense<0.000000e+00> : vector<8xf32>
      %61 = vector.multi_reduction <add>, %60, %cst_43 [0] : vector<2x8xf32> to vector<8xf32>
      %62 = vector.shape_cast %61 : vector<8xf32> to vector<1x8xf32>
      %63 = vector.broadcast %62 : vector<1x8xf32> to vector<2x8xf32>
      %64 = arith.divf %60, %63 : vector<2x8xf32>
      %c0_44 = arith.constant 0 : index
      %c0_45 = arith.constant 0 : index
      %65 = vector.load %arg12[%c0_44, %c0_45] : memref<2x8xf32, #tpu.memory_space<vmem>>, vector<2x8xf32>
      tpu.vector_store %arg12[%c0_44, %c0_45], %64 {strides = array<i32>} : memref<2x8xf32, #tpu.memory_space<vmem>>, vector<2x8xf32>,
    } else {
    }
    %c0_i32_2 = arith.constant 0 : i32
    %5 = arith.cmpi eq, %arg0, %c0_i32_2 : i32
    %6 = arith.extui %5 : i1 to i32
    %c0_i32_3 = arith.constant 0 : i32
    %7 = arith.cmpi ne, %6, %c0_i32_3 : i32
    scf.if %7 {
      %c0 = arith.constant 0 : index
      %c0_8 = arith.constant 0 : index
      %16 = vector.load %arg10[%c0, %c0_8] : memref<32x128xf32, #tpu.memory_space<vmem>>, vector<32x128xf32>
      %c0_9 = arith.constant 0 : index
      %c0_10 = arith.constant 0 : index
      %17 = vector.load %arg14[%c0_9, %c0_10] : memref<8x32xf32, #tpu.memory_space<vmem>>, vector<8x32xf32>
      %18 = arith.mulf %16, %16 : vector<32x128xf32>
      %cst = arith.constant dense<0.000000e+00> : vector<8x128xf32>
      %19 = tpu.matmul %17, %18, %cst {dimension_numbers = #tpu.dot_dimension_numbers<[1], [0], [0], [1], [0, 0, 1, 1], [], []>} : vector<8x32xf32>, vector<32x128xf32>, vector<8x128xf32> -> vector<8x128xf32>
      %c0_11 = arith.constant 0 : index
      %c0_12 = arith.constant 0 : index
      %20 = vector.load %arg15[%c0_11, %c0_12] : memref<8x32xf32, #tpu.memory_space<vmem>>, vector<8x32xf32>
      %cst_13 = arith.constant dense<0.000000e+00> : vector<8x128xf32>
      %21 = tpu.matmul %20, %16, %cst_13 {dimension_numbers = #tpu.dot_dimension_numbers<[1], [0], [0], [1], [0, 0, 1, 1], [], []>} : vector<8x32xf32>, vector<32x128xf32>, vector<8x128xf32> -> vector<8x128xf32>
      %22 = arith.addf %19, %21 : vector<8x128xf32>
      %c0_14 = arith.constant 0 : index
      %c0_15 = arith.constant 0 : index
      %23 = vector.load %arg16[%c0_14, %c0_15] : memref<8x1xf32, #tpu.memory_space<vmem>>, vector<8x1xf32>
      %24 = vector.broadcast %23 : vector<8x1xf32> to vector<8x128xf32>
      %25 = arith.addf %22, %24 : vector<8x128xf32>
      %26 = arith.index_cast %arg1 : i32 to index
      %c0_16 = arith.constant 0 : index
      %c0_17 = arith.constant 0 : index
      %27 = vector.load %arg19[%26, %c0_16, %c0_17] : memref<2x8x128xf32, #tpu.memory_space<vmem>>, vector<1x8x128xf32>
      %28 = vector.shape_cast %27 : vector<1x8x128xf32> to vector<8x128xf32>
      %29 = vector.shape_cast %25 : vector<8x128xf32> to vector<1x8x128xf32>
      tpu.vector_store %arg19[%26, %c0_16, %c0_17], %29 {strides = array<i32>} : memref<2x8x128xf32, #tpu.memory_space<vmem>>, vector<1x8x128xf32>,
      %c0_18 = arith.constant 0 : index
      %c0_19 = arith.constant 0 : index
      %30 = vector.load %arg17[%c0_18, %c0_19] : memref<8x1xf32, #tpu.memory_space<vmem>>, vector<8x1xf32>
      %cst_20 = arith.constant dense<0xFF800000> : vector<8xf32>
      %31 = vector.multi_reduction <maximumf>, %25, %cst_20 [1] : vector<8x128xf32> to vector<8xf32>
      %32 = vector.shape_cast %31 : vector<8xf32> to vector<8x1xf32>
      %33 = arith.maximumf %30, %32 : vector<8x1xf32>
      %c0_21 = arith.constant 0 : index
      %c0_22 = arith.constant 0 : index
      %34 = vector.load %arg18[%c0_21, %c0_22] : memref<8x1xf32, #tpu.memory_space<vmem>>, vector<8x1xf32>
      %c0_23 = arith.constant 0 : index
      %c0_24 = arith.constant 0 : index
      %35 = vector.load %arg17[%c0_23, %c0_24] : memref<8x1xf32, #tpu.memory_space<vmem>>, vector<8x1xf32>
      %36 = arith.subf %35, %33 : vector<8x1xf32>
      %37 = math.exp %36 : vector<8x1xf32>
      %38 = arith.mulf %34, %37 : vector<8x1xf32>
      %39 = vector.broadcast %33 : vector<8x1xf32> to vector<8x128xf32>
      %40 = arith.subf %25, %39 : vector<8x128xf32>
      %41 = math.exp %40 : vector<8x128xf32>
      %cst_25 = arith.constant dense<0.000000e+00> : vector<8xf32>
      %42 = vector.multi_reduction <add>, %41, %cst_25 [1] : vector<8x128xf32> to vector<8xf32>
      %43 = vector.shape_cast %42 : vector<8xf32> to vector<8x1xf32>
      %44 = arith.addf %38, %43 : vector<8x1xf32>
      %c0_26 = arith.constant 0 : index
      %c0_27 = arith.constant 0 : index
      %45 = vector.load %arg18[%c0_26, %c0_27] : memref<8x1xf32, #tpu.memory_space<vmem>>, vector<8x1xf32>
      tpu.vector_store %arg18[%c0_26, %c0_27], %44 {strides = array<i32>} : memref<8x1xf32, #tpu.memory_space<vmem>>, vector<8x1xf32>,
      %c0_28 = arith.constant 0 : index
      %c0_29 = arith.constant 0 : index
      %46 = vector.load %arg17[%c0_28, %c0_29] : memref<8x1xf32, #tpu.memory_space<vmem>>, vector<8x1xf32>
      tpu.vector_store %arg17[%c0_28, %c0_29], %33 {strides = array<i32>} : memref<8x1xf32, #tpu.memory_space<vmem>>, vector<8x1xf32>,
    } else {
    }
    %c1_i32 = arith.constant 1 : i32
    %8 = arith.cmpi eq, %arg0, %c1_i32 : i32
    %c0_i32_4 = arith.constant 0 : i32
    %9 = arith.cmpi eq, %arg1, %c0_i32_4 : i32
    %10 = arith.andi %8, %9 : i1
    %11 = arith.extui %10 : i1 to i32
    %c0_i32_5 = arith.constant 0 : i32
    %12 = arith.cmpi ne, %11, %c0_i32_5 : i32
    scf.if %12 {
      %c0 = arith.constant 0 : index
      %c0_8 = arith.constant 0 : index
      %16 = vector.load %arg18[%c0, %c0_8] : memref<8x1xf32, #tpu.memory_space<vmem>>, vector<8x1xf32>
      %17 = tpu.reciprocal %16 {approx = true} : vector<8x1xf32> -> vector<8x1xf32>
      %cst = arith.constant 1.000000e+00 : f32
      %18 = vector.broadcast %cst : f32 to vector<8x1xf32>
      %19 = arith.mulf %17, %18 : vector<8x1xf32>
      %c0_9 = arith.constant 0 : index
      %c0_10 = arith.constant 0 : index
      %20 = vector.load %arg18[%c0_9, %c0_10] : memref<8x1xf32, #tpu.memory_space<vmem>>, vector<8x1xf32>
      tpu.vector_store %arg18[%c0_9, %c0_10], %19 {strides = array<i32>} : memref<8x1xf32, #tpu.memory_space<vmem>>, vector<8x1xf32>,
    } else {
    }
    %c1_i32_6 = arith.constant 1 : i32
    %13 = arith.cmpi eq, %arg0, %c1_i32_6 : i32
    %14 = arith.extui %13 : i1 to i32
    %c0_i32_7 = arith.constant 0 : i32
    %15 = arith.cmpi ne, %14, %c0_i32_7 : i32
    scf.if %15 {
      %16 = arith.index_cast %arg1 : i32 to index
      %c0 = arith.constant 0 : index
      %c0_8 = arith.constant 0 : index
      %17 = vector.load %arg19[%16, %c0, %c0_8] : memref<2x8x128xf32, #tpu.memory_space<vmem>>, vector<1x8x128xf32>
      %18 = vector.shape_cast %17 : vector<1x8x128xf32> to vector<8x128xf32>
      %c0_9 = arith.constant 0 : index
      %c0_10 = arith.constant 0 : index
      %19 = vector.load %arg17[%c0_9, %c0_10] : memref<8x1xf32, #tpu.memory_space<vmem>>, vector<8x1xf32>
      %20 = vector.broadcast %19 : vector<8x1xf32> to vector<8x128xf32>
      %21 = arith.subf %18, %20 : vector<8x128xf32>
      %22 = math.exp %21 : vector<8x128xf32>
      %c0_11 = arith.constant 0 : index
      %c0_12 = arith.constant 0 : index
      %23 = vector.load %arg18[%c0_11, %c0_12] : memref<8x1xf32, #tpu.memory_space<vmem>>, vector<8x1xf32>
      %24 = vector.broadcast %23 : vector<8x1xf32> to vector<8x128xf32>
      %25 = arith.mulf %22, %24 : vector<8x128xf32>
      %cst = arith.constant 9.99999943E-11 : f32
      %26 = vector.broadcast %cst : f32 to vector<8x128xf32>
      %27 = arith.addf %25, %26 : vector<8x128xf32>
      %c0_13 = arith.constant 0 : index
      %c0_14 = arith.constant 0 : index
      %28 = vector.load %arg13[%c0_13, %c0_14] : memref<8x128xf32, #tpu.memory_space<vmem>>, vector<8x128xf32>
      tpu.vector_store %arg13[%c0_13, %c0_14], %27 {strides = array<i32>} : memref<8x128xf32, #tpu.memory_space<vmem>>, vector<8x128xf32>,
      %c0_15 = arith.constant 0 : index
      %c0_16 = arith.constant 0 : index
      %29 = vector.load %arg12[%c0_15, %c0_16] : memref<2x8xf32, #tpu.memory_space<vmem>>, vector<2x8xf32>
      %cst_17 = arith.constant dense<0.000000e+00> : vector<2x128xf32>
      %30 = tpu.matmul %29, %27, %cst_17 {dimension_numbers = #tpu.dot_dimension_numbers<[1], [0], [0], [1], [0, 0, 1, 1], [], []>} : vector<2x8xf32>, vector<8x128xf32>, vector<2x128xf32> -> vector<2x128xf32>
      %cst_18 = arith.constant 1.000000e-10 : f32
      %31 = vector.broadcast %cst_18 : f32 to vector<2x128xf32>
      %32 = arith.addf %30, %31 : vector<2x128xf32>
      %33 = math.log %32 : vector<2x128xf32>
      %c0_19 = arith.constant 0 : index
      %c0_20 = arith.constant 0 : index
      %34 = vector.load %arg4[%c0_19, %c0_20] : memref<2x128xf32, #tpu.memory_space<vmem>>, vector<2x128xf32>
      %35 = arith.mulf %33, %34 : vector<2x128xf32>
      %c0_21 = arith.constant 0 : index
      %c0_22 = arith.constant 0 : index
      %36 = vector.load %arg11[%c0_21, %c0_22] : memref<2x128xf32, #tpu.memory_space<vmem>>, vector<2x128xf32>
      %37 = arith.addf %36, %35 : vector<2x128xf32>
      %c0_23 = arith.constant 0 : index
      %c0_24 = arith.constant 0 : index
      %38 = vector.load %arg11[%c0_23, %c0_24] : memref<2x128xf32, #tpu.memory_space<vmem>>, vector<2x128xf32>
      tpu.vector_store %arg11[%c0_23, %c0_24], %37 {strides = array<i32>} : memref<2x128xf32, #tpu.memory_space<vmem>>, vector<2x128xf32>,
    } else {
    }
    return
  }
  func.func @transform_0(%arg0: i32, %arg1: i32) -> (i32, i32) {
    %c0_i32 = arith.constant 0 : i32
    %c0_i32_0 = arith.constant 0 : i32
    %c0_i32_1 = arith.constant 0 : i32
    return %c0_i32, %c0_i32_0 : i32, i32
  }
  func.func @transform_1(%arg0: i32, %arg1: i32) -> (i32, i32) {
    %c0_i32 = arith.constant 0 : i32
    %c0_i32_0 = arith.constant 0 : i32
    %c0_i32_1 = arith.constant 0 : i32
    return %c0_i32, %c0_i32_0 : i32, i32
  }
  func.func @transform_2(%arg0: i32, %arg1: i32) -> (i32, i32) {
    %0 = arith.muli %arg1, %arg0 : i32
    %c0_i32 = arith.constant 0 : i32
    %c0_i32_0 = arith.constant 0 : i32
    return %c0_i32, %0 : i32, i32
  }
  func.func @transform_3(%arg0: i32, %arg1: i32) -> (i32, i32) {
    %c0_i32 = arith.constant 0 : i32
    %c0_i32_0 = arith.constant 0 : i32
    %c0_i32_1 = arith.constant 0 : i32
    return %c0_i32, %c0_i32_0 : i32, i32
  }
  func.func @transform_4(%arg0: i32, %arg1: i32) -> (i32, i32) {
    %c0_i32 = arith.constant 0 : i32
    %c0_i32_0 = arith.constant 0 : i32
    %c0_i32_1 = arith.constant 0 : i32
    return %c0_i32, %c0_i32_0 : i32, i32
  }
  func.func @transform_5(%arg0: i32, %arg1: i32) -> (i32, i32) {
    %c0_i32 = arith.constant 0 : i32
    %c0_i32_0 = arith.constant 0 : i32
    %c0_i32_1 = arith.constant 0 : i32
    return %c0_i32, %c0_i32_0 : i32, i32
  }
  func.func @transform_6(%arg0: i32, %arg1: i32) -> (i32, i32) {
    %c0_i32 = arith.constant 0 : i32
    %c0_i32_0 = arith.constant 0 : i32
    %c0_i32_1 = arith.constant 0 : i32
    return %c0_i32, %c0_i32_0 : i32, i32
  }
  func.func @transform_7(%arg0: i32, %arg1: i32) -> (i32, i32) {
    %c0_i32 = arith.constant 0 : i32
    %c0_i32_0 = arith.constant 0 : i32
    %c0_i32_1 = arith.constant 0 : i32
    return %c0_i32, %c0_i32_0 : i32, i32
  }
  func.func @transform_8(%arg0: i32, %arg1: i32) -> (i32, i32) {
    %c1_i32 = arith.constant 1 : i32
    %0 = arith.subi %c1_i32, %arg0 : i32
    %1 = arith.muli %arg1, %0 : i32
    %c1_i32_0 = arith.constant 1 : i32
    %2 = arith.muli %c1_i32_0, %arg0 : i32
    %3 = arith.addi %1, %2 : i32
    %c0_i32 = arith.constant 0 : i32
    %c0_i32_1 = arith.constant 0 : i32
    return %c0_i32, %3 : i32, i32
  }
  func.func @transform_9(%arg0: i32, %arg1: i32) -> (i32, i32) {
    %c0_i32 = arith.constant 0 : i32
    %c0_i32_0 = arith.constant 0 : i32
    %c0_i32_1 = arith.constant 0 : i32
    return %c0_i32, %c0_i32_0 : i32, i32
  }
  func.func @transform_10(%arg0: i32, %arg1: i32) -> (i32, i32) {
    %c0_i32 = arith.constant 0 : i32
    %c0_i32_0 = arith.constant 0 : i32
    %c0_i32_1 = arith.constant 0 : i32
    return %c0_i32, %c0_i32_0 : i32, i32
  }
  func.func @transform_11(%arg0: i32, %arg1: i32) -> (i32, i32) {
    %0 = arith.muli %arg1, %arg0 : i32
    %c0_i32 = arith.constant 0 : i32
    %c0_i32_0 = arith.constant 0 : i32
    return %c0_i32, %0 : i32, i32
  }
}

</mosaic_0001>

<bundles_post_ra>
// kernel: tpu_custom_call.1
= control target key start
LH: loop header
LB: loop body
LE: loop exit
PB: predicated region body
PF: predicated region fallthrough
CT: control target
= control target key end

     0   :  { %s2369_s0 = inlined_call_operand.hbm [shape: f32[2,8], index: 0, kind: input, shape index: {}]   ;;  %s2370_s1 = inlined_call_operand.vmem [shape: f32[2,8], index: 1, kind: input, shape index: {}]   ;;  %s2371_s2 = inlined_call_operand.hbm [shape: f32[2,256], index: 2, kind: input, shape index: {}]   ;;  %s2372_s3 = inlined_call_operand.hbm [shape: f32[1,8], index: 3, kind: input, shape index: {}]   ;;  %s2373_s4 = inlined_call_operand.vmem [shape: f32[8,8], index: 4, kind: input, shape index: {}]   ;;  %s2374_s5 = inlined_call_operand.hbm [shape: f32[1,8], index: 5, kind: input, shape index: {}]   ;;  %s2375_s6 = inlined_call_operand.vmem [shape: f32[8,32], index: 6, kind: input, shape index: {}]   ;;  %s2376_s7 = inlined_call_operand.vmem [shape: f32[8,32], index: 7, kind: input, shape index: {}]   ;;  %s2377_s8 = inlined_call_operand.hbm [shape: f32[32,256], index: 8, kind: input, shape index: {}]   ;;  %s2378_s9 = inlined_call_operand.hbm [shape: f32[2,128], index: 9, kind: output, shape index: {0}]   ;;  %s2379_s10 = inlined_call_operand.hbm [shape: f32[2,8], index: 10, kind: output, shape index: {1}]   ;;  %s2380_s11 = inlined_call_operand.hbm [shape: f32[8,256], index: 11, kind: output, shape index: {2}]  }
   0x1   :  { %2394 = sst [smem:[#allocation33_spill]] %s2369_s0 }
   0x2   :  { %2395 = sst [smem:[#allocation34_spill]] %s2370_s1 }
   0x3   :  { %2396 = sst [smem:[#allocation35_spill]] %s2371_s2 }
   0x4   :  { %2397 = sst [smem:[#allocation36_spill]] %s2372_s3 }
   0x5   :  { %2398 = sst [smem:[#allocation37_spill]] %s2373_s4 }
   0x6   :  { %2399 = sst [smem:[#allocation38_spill]] %s2374_s5 }
   0x7   :  { %2400 = sst [smem:[#allocation39_spill]] %s2375_s6 }
   0x8   :  { %2401 = sst [smem:[#allocation40_spill]] %s2376_s7 }
   0x9   :  { %2402 = sst [smem:[#allocation41_spill]] %s2378_s9 }
   0xa   :  { %2403 = sst [smem:[#allocation42_spill]] %s2379_s10 }
   0xb   :  { %2404 = sst [smem:[#allocation43_spill]] %s2380_s11 }
   0xc   :  { %17 = vsyncpa [#allocation9], 0 }
   0xd   :  { %18 = vsyncpa [#allocation12], 0 }
   0xe   :  { %20 = vsyncpa [#allocation12 + $0x1], 0 }
   0xf   :  { %21 = vsyncpa [#allocation15], 0 }
  0x10   :  { %22 = vsyncpa [#allocation10], 0 }
  0x11   :  { %23 = vsyncpa [#allocation19], 0  ;;  %s1857_s17 = smov 0   ;;  %s1859_s18 = smov 0  }
  0x12   :  { %s1861_s19 = smov 0   ;;  %s1863_s20 = smov 0  }
  0x13   :  { %s1865_s21 = smov 0   ;;  %s1867_s22 = smov 0  }
  0x14   :  { %s1869_s23 = smov 0   ;;  %s1871_s24 = smov 0  }
  0x15   :  { %s1873_s25 = smov 0   ;;  %s1875_s26 = smov 0  }
  0x16   :  { %s1877_s27 = smov 0  }
  0x17 LB: > { %2405 = sst [smem:[#allocation29_spill]] %s1758_s23  ;;  %s1911_s28 = sadd.s32 4294967295, %s1774_s27   ;;  %s1774_s27 = sphi %s1877_s27, %s29_s27   ;;  %s1770_s26 = sphi %s1875_s26, %s2464_s26   ;;  %s1766_s25 = sphi %s1873_s25, %s2472_s25   ;;  %s1762_s24 = sphi %s1871_s24, %s2462_s24   ;;  %s1758_s23 = sphi %s1869_s23, %s2471_s23   ;;  %s1754_s22 = sphi %s1867_s22, %s2470_s22   ;;  %s1750_s21 = sphi %s1865_s21, %s2469_s21   ;;  %s1746_s20 = sphi %s1863_s20, %s2468_s20   ;;  %s1742_s19 = sphi %s1861_s19, %s2467_s19   ;;  %s1738_s18 = sphi %s1859_s18, %s2466_s18   ;;  %s1734_s17 = sphi %s1857_s17, %s2465_s17  }
  0x18   : > { %2406 = sst [smem:[#allocation30_spill]] %s1770_s26  ;;  %p242_p0 = scmp.ne.s32.totalorder %s1738_s18, %s1734_s17 }
  0x19   : > { %p2384_p1 = scmp.eq.s32.totalorder %s1911_s28, 0  ;;  %p1154_p3 = scmp.ge.s32.totalorder %s1774_s27, 1 }
  0x1a   : > { %p323_p4 = scmp.lt.s32.totalorder %s1774_s27, 5  ;;  %s1776_s12 = smov [#allocation8]  }
  0x1b   : > { %p1920_p5 = por %p242_p0, %p2384_p1  ;;  %s336_s13 = sshll.u32 %s1776_s12, 4  ;;  %s337_s13 = int_to_ptr.vmem [resolvable:$true] %s336_s13 }
  0x1c   : > { %p1924_p6 = pnand %p1154_p3, %p323_p4  ;;  %s1777_s15 = smov [#allocation13]  }
  0x1d   : > { %s2407_s29 = scalar_select %p1920_p5, 1, 0 }
  0x1e   : > { %s2408_s30 = scalar_select %p1924_p6, 1, 0 }
  0x1f   : > { %p1272_p7 = pneg %p1924_p6  ;;  %s350_s16 = sshll.u32 %s1777_s15, 4  ;;  %s1936_s16 = int_to_ptr.vmem [resolvable:$true] %s350_s16 }
  0x20   : > { %s1778_s17 = smov [#allocation14]   ;;  %s2410_s0 = sld [smem:[#allocation33_spill]] }
  0x21   : > { %p1932_p8 = pnand %p1272_p7, %p2384_p1  ;;  %s364_s11 = sshll.u32 %s1778_s17, 4  ;;  %s1938_s11 = int_to_ptr.vmem [resolvable:$true] %s364_s11 }
  0x23   : > { %p1948_p10 = pneg %p1932_p8 }
  0x26   : > { %s1432_s12 = scalar_lea.hbm %s2410_s0, 32 }
  0x27   : > { %p1433_p9 = scmp.ne.s32.totalorder %s2410_s0, %s1432_s12  ;;  %p1439_p13 = scmp.lt.u32.totalorder %s1432_s12, %s2410_s0 }
  0x29   : > { %p1435_p11 = pnand %p1948_p10, %p1433_p9 }
  0x2b   : > { %p1436_p12 = pneg %p1435_p11 }
  0x2d   : > { %p1441_p0 = pnand %p1439_p13, %p1436_p12 }
  0x2f   : > { %1444 = shalt.err (!%p1441_p0)
}
  0x30   : > { %s1445_s9 = scalar_lea.vmem %s337_s13, 32  ;;  %p1453_p2 = scmp.lt.s32.totalorder %s337_s13, %s337_s13 }
  0x31   : > { %p1446_p3 = scmp.ne.s32.totalorder %s337_s13, %s1445_s9  ;;  %p1454_p1 = scmp.lt.s32.totalorder %s1445_s9, %s1445_s9 }
  0x33   : > { %p1448_p4 = pnand %p1446_p3, %p1948_p10  ;;  %p1455_p5 = por %p1454_p1, %p1453_p2 }
  0x35   : > { %p1449_p7 = pneg %p1448_p4 }
  0x37   : > { %p1456_p6 = pnand %p1455_p5, %p1449_p7 }
  0x39   : > { %1459 = shalt.err (!%p1456_p6)
}
  0x3a   : > { %1275 = dma.hbm_to_vmem [thread:$0]  (!%p1932_p8), %s2410_s0, 32, %s337_s13, [#allocation9]  }
  0x3b   : > { %s2412_s3 = sld [smem:[#allocation36_spill]] }
  0x41   : > { %s1460_s15 = scalar_lea.hbm %s2412_s3, 16 }
  0x42   : > { %p1461_p9 = scmp.ne.s32.totalorder %s2412_s3, %s1460_s15  ;;  %p1467_p2 = scmp.lt.u32.totalorder %s1460_s15, %s2412_s3 }
  0x44   : > { %p1463_p11 = pnand %p1461_p9, %p1948_p10 }
  0x46   : > { %p1464_p1 = pneg %p1463_p11 }
  0x48   : > { %p1469_p5 = pnand %p1467_p2, %p1464_p1 }
  0x4a   : > { %1472 = shalt.err (!%p1469_p5)
}
  0x4b   : > { %s1473_s13 = scalar_lea.vmem %s1936_s16, 16  ;;  %s1480_s4 = scalar_lea.vmem %s1936_s16, 32 }
  0x4c   : > { %p1474_p6 = scmp.ne.s32.totalorder %s1936_s16, %s1473_s13  ;;  %p1481_p0 = scmp.lt.s32.totalorder %s1936_s16, %s1936_s16 }
  0x4d   : > { %p1482_p3 = scmp.lt.s32.totalorder %s1480_s4, %s1473_s13 }
  0x4e   : > { %p1476_p12 = pnand %p1474_p6, %p1948_p10 }
  0x4f   : > { %p1483_p4 = por %p1482_p3, %p1481_p0 }
  0x50   : > { %p1477_p13 = pneg %p1476_p12 }
  0x52   : > { %p1484_p7 = pnand %p1483_p4, %p1477_p13 }
  0x54   : > { %1487 = shalt.err (!%p1484_p7)
}
  0x55   : > { %1278 = dma.hbm_to_vmem [thread:$0]  (!%p1932_p8), %s2412_s3, 16, %s1936_s16, [#allocation12]  }
  0x56   : > { %s2413_s5 = sld [smem:[#allocation38_spill]] }
  0x5c   : > { %s1488_s12 = scalar_lea.hbm %s2413_s5, 16 }
  0x5d   : > { %p1489_p9 = scmp.ne.s32.totalorder %s2413_s5, %s1488_s12  ;;  %p1495_p2 = scmp.lt.u32.totalorder %s1488_s12, %s2413_s5 }
  0x5f   : > { %p1491_p11 = pnand %p1489_p9, %p1948_p10 }
  0x61   : > { %p1492_p1 = pneg %p1491_p11 }
  0x63   : > { %p1497_p5 = pnand %p1495_p2, %p1492_p1 }
  0x65   : > { %1500 = shalt.err (!%p1497_p5)
}
  0x66   : > { %s1501_s16 = scalar_lea.vmem %s1938_s11, 16  ;;  %s1508_s4 = scalar_lea.vmem %s1938_s11, 32 }
  0x67   : > { %p1502_p6 = scmp.ne.s32.totalorder %s1938_s11, %s1501_s16  ;;  %p1509_p0 = scmp.lt.s32.totalorder %s1938_s11, %s1938_s11 }
  0x68   : > { %p1510_p3 = scmp.lt.s32.totalorder %s1508_s4, %s1501_s16 }
  0x69   : > { %p1504_p12 = pnand %p1502_p6, %p1948_p10 }
  0x6a   : > { %p1511_p4 = por %p1510_p3, %p1509_p0 }
  0x6b   : > { %p1505_p13 = pneg %p1504_p12 }
  0x6d   : > { %p1512_p7 = pnand %p1511_p4, %p1505_p13 }
  0x6f   : > { %1515 = shalt.err (!%p1512_p7)
}
  0x70   : > { %1281 = dma.hbm_to_vmem [thread:$0]  (!%p1932_p8), %s2413_s5, 16, %s1938_s11, [#allocation15]  }
  0x71   : > { %s38_s14 = sadd.s32 1, %s1766_s25  ;;  %s41_s7 = sadd.s32 1, %s1770_s26 }
  0x72   : > { %p39_p10 = scmp.ge.s32.totalorder %s38_s14, 2  ;;  %s2017_s10 = smul.u32 %s1766_s25, %s1770_s26 }
  0x73   : > { %s92_s12 = sadd.s32 1, %s1754_s22  ;;  %p99_p8 = scmp.ne.s32.totalorder %s1754_s22, %s1750_s21 }
  0x74   : > { %s2474_s14 = smov (%p39_p10, %s38_s14), 0  ;;  %s2476_s7 = smov (!%p39_p10, %s41_s7), %s1770_s26 }
  0x75   : > { %2414 = sst [smem:[#allocation31_spill]] %s2474_s14  ;;  %p100_p9 = scmp.eq.s32.totalorder %s1774_s27, 0 }
  0x76   : > { %p43_p11 = scmp.ge.s32.totalorder %s2476_s7, 2  ;;  %p105_p1 = scmp.ne.s32.totalorder %s1750_s21, %s1746_s20 }
  0x77   : > { %p2033_p2 = por %p100_p9, %p99_p8  ;;  %s220_s15 = ssub.s32 1, %s1770_s26 }
  0x78   : > { %s2478_s7 = smov (%p43_p11, %s2476_s7), 0  ;;  %p2417_p5 = scmp.eq.s32.totalorder %s1911_s28, 0 }
  0x79   : > { %2416 = sst [smem:[#allocation32_spill]] %s2478_s7  ;;  %s221_s9 = smul.u32 %s1766_s25, %s220_s15 }
  0x7a   : > { %p2045_p6 = por %p2417_p5, %p105_p1  ;;  %s88_s13 = smul.u32 %s2478_s7, %s2474_s14 }
  0x7b   : > { %s223_s16 = ssub.s32 1, %s2478_s7  ;;  %s2054_s4 = sadd.s32 %s1770_s26, %s221_s9 }
  0x7c   : > { %s2418_s17 = scalar_select %p2045_p6, 1, 0 }
  0x7d   : > { %s224_s23 = smul.u32 %s223_s16, %s2474_s14  ;;  %s89_s6 = ssub.s32 %s2017_s10, %s88_s13 }
  0x7e   : > { %s229_s1 = sadd.s32 1, %s1742_s19  ;;  %p90_p12 = scmp.eq.s32.totalorder %s89_s6, 0 }
  0x7f   : > { %s225_s0 = sadd.s32 %s224_s23, %s2478_s7  ;;  %p236_p13 = scmp.ne.s32.totalorder %s1742_s19, %s1738_s18 }
  0x80   : > { %s226_s3 = ssub.s32 %s2054_s4, %s225_s0  ;;  %p2420_p4 = scmp.eq.s32.totalorder %s1911_s28, 3 }
  0x81   : > { %s2064_s15 = scalar_select %p90_p12, %s1754_s22, %s92_s12  }
  0x82   : > { %p227_p0 = scmp.eq.s32.totalorder %s226_s3, 0  ;;  %p2068_p3 = por %p236_p13, %p100_p9 }
  0x83   : > { %p2077_p7 = por %p2420_p4, %p99_p8  ;;  %s2422_s16 = sadd.s32 4294967294, %s1774_s27  }
  0x84   : > { %p316_p10 = scmp.eq.s32.totalorder %s2422_s16, 3  ;;  %p1296_p9 = scmp.lt.s32.totalorder %s1774_s27, 4 }
  0x85   : > { %s2421_s13 = scalar_select %p2077_p7, 1, 0 }
  0x86   : > { %s2084_s0 = scalar_select %p227_p0, %s1742_s19, %s229_s1  }
  0x87   : > { %p2089_p11 = por %p316_p10, %p105_p1  ;;  %s2391_s12 = sand.u32 1, %s1774_s27  }
  0x88   : > { %s383_s23 = sand.u32 1, %s1754_s22   ;;  %s1160_s5 = sshll.u32 %s2017_s10, 5 }
  0x89   : > { %s2423_s3 = scalar_select %p2089_p11, 1, 0 }
  0x8a   : > { %s1159_s6 = sshll.u32 %s383_s23, 1  ;;  %s2424_s2 = sld [smem:[#allocation35_spill]] }
  0x8b   : > { %s385_s1 = scalar_lea.vmem [#allocation11], %s1159_s6  ;;  %p2106_p8 = pnand %p1296_p9, %p2033_p2 }
  0x8c   : > { %s393_s20 = sshll.u32 %s385_s1, 4  ;;  %s1162_s10 = sshll.u32 %s2054_s4, 7  ;;  %s2102_s20 = int_to_ptr.vmem [resolvable:$true] %s393_s20 }
  0x8d   : > { %p2113_p1 = pnand %p1296_p9, %p2068_p3  ;;  %s382_s14 = scalar_lea.sflag [#allocation12], %s2391_s12 }
  0x8e   : > { %p1518_p12 = pneg %p2106_p8 }
  0x90   : > { %s2100_s26 = scalar_lea.hbm %s2424_s2, %s1160_s5  ;;  %s1521_s6 = scalar_lea.hbm %s2424_s2, 64 }
  0x91   : > { %s1516_s7 = scalar_lea.hbm %s2100_s26, 32  ;;  %p1522_p0 = scmp.lt.u32.totalorder %s2100_s26, %s2424_s2 }
  0x92   : > { %p1517_p5 = scmp.ne.s32.totalorder %s2100_s26, %s1516_s7  ;;  %p1523_p3 = scmp.lt.u32.totalorder %s1521_s6, %s1516_s7 }
  0x93   : > { %p1525_p10 = scmp.lt.u32.totalorder %s1516_s7, %s2100_s26 }
  0x94   : > { %p1519_p2 = pnand %p1518_p12, %p1517_p5  ;;  %p1524_p4 = por %p1523_p3, %p1522_p0 }
  0x96   : > { %p1520_p13 = pneg %p1519_p2  ;;  %p1526_p9 = por %p1525_p10, %p1524_p4 }
  0x98   : > { %p1527_p11 = pnand %p1526_p9, %p1520_p13 }
  0x9a   : > { %1530 = shalt.err (!%p1527_p11)
}
  0x9b   : > { %s1531_s12 = scalar_lea.vmem %s2102_s20, 32  ;;  %s1779_s11 = smov [#allocation11]  }
  0x9c   : > { %p1532_p5 = scmp.ne.s32.totalorder %s2102_s20, %s1531_s12  ;;  %s1536_s23 = sshll.u32 %s1779_s11, 4  ;;  %s1537_s23 = int_to_ptr.vmem [resolvable:$false] %s1536_s23 }
  0x9d   : > { %s1538_s1 = scalar_lea.vmem %s1537_s23, 64  ;;  %p1539_p6 = scmp.lt.s32.totalorder %s2102_s20, %s1537_s23 }
  0x9e   : > { %p1534_p2 = pnand %p1532_p5, %p1518_p12  ;;  %p1540_p0 = scmp.lt.s32.totalorder %s1538_s1, %s1531_s12 }
  0xa0   : > { %p1535_p7 = pneg %p1534_p2  ;;  %p1541_p3 = por %p1540_p0, %p1539_p6 }
  0xa2   : > { %p1542_p4 = pnand %p1541_p3, %p1535_p7 }
  0xa4   : > { %1545 = shalt.err (!%p1542_p4)
}
  0xa5   : > { %1285 = dma.hbm_to_vmem [thread:$0]  (!%p2106_p8), %s2100_s26, 32, %s2102_s20, %s382_s14  }
  0xa6   : > { %s402_s7 = sand.u32 1, %s1742_s19   ;;  %s2150_s12 = scalar_lea.hbm %s2377_s8, %s1162_s10 }
  0xa7   : > { %s1161_s6 = sshll.u32 %s402_s7, 5  ;;  %s2427_s1 = sand.u32 1, %s1774_s27  }
  0xa8   : > { %s404_s16 = scalar_lea.vmem [#allocation16], %s1161_s6  ;;  %s2156_s2 = scalar_lea.sflag [#allocation9], %s2427_s1 }
  0xa9   : > { %s413_s23 = sshll.u32 %s404_s16, 4  ;;  %s1546_s26 = scalar_lea.hbm %s2150_s12, 512  ;;  %s2152_s23 = int_to_ptr.vmem [resolvable:$true] %s413_s23 }
  0xaa   : > { %p1547_p6 = scmp.ne.s32.totalorder %s2150_s12, %s1546_s26  ;;  %p1548_p7 = pneg %p2113_p1 }
  0xab   : > { %s1551_s10 = scalar_lea.hbm %s2377_s8, 1024  ;;  %p1552_p12 = scmp.lt.u32.totalorder %s2150_s12, %s2377_s8 }
  0xac   : > { %p1549_p11 = pnand %p1548_p7, %p1547_p6  ;;  %p1553_p13 = scmp.lt.u32.totalorder %s1551_s10, %s1546_s26 }
  0xad   : > { %p1555_p9 = scmp.lt.u32.totalorder %s1546_s26, %s2150_s12 }
  0xae   : > { %p1550_p8 = pneg %p1549_p11  ;;  %p1554_p10 = por %p1553_p13, %p1552_p12 }
  0xb0   : > { %p1556_p5 = por %p1555_p9, %p1554_p10 }
  0xb2   : > { %p1557_p2 = pnand %p1556_p5, %p1550_p8 }
  0xb4   : > { %1560 = shalt.err (!%p1557_p2)
}
  0xb5   : > { %s1561_s6 = scalar_lea.vmem %s2152_s23, 512  ;;  %s1780_s9 = smov [#allocation16]  }
  0xb6   : > { %p1562_p0 = scmp.ne.s32.totalorder %s2152_s23, %s1561_s6  ;;  %s1566_s11 = sshll.u32 %s1780_s9, 4  ;;  %s1567_s11 = int_to_ptr.vmem [resolvable:$false] %s1566_s11 }
  0xb7   : > { %s1568_s16 = scalar_lea.vmem %s1567_s11, 1024  ;;  %p1569_p6 = scmp.lt.s32.totalorder %s2152_s23, %s1567_s11 }
  0xb8   : > { %p1564_p3 = pnand %p1562_p0, %p1548_p7  ;;  %p1570_p11 = scmp.lt.s32.totalorder %s1568_s16, %s1561_s6 }
  0xba   : > { %p1565_p4 = pneg %p1564_p3  ;;  %p1571_p12 = por %p1570_p11, %p1569_p6 }
  0xbc   : > { %p1572_p13 = pnand %p1571_p12, %p1565_p4 }
  0xbe   : > { %1575 = shalt.err (!%p1572_p13)
}
  0xbf   : > { %s1781_s1 = smov 256   ;;  %s1782_s26 = smov 128  }
  0xc0   : > { %s1783_s4 = smov 8   ;;  %p2428_p7 = scmp.ne.s32.totalorder %s2408_s30, 0 }
  0xc1   : > { %1288 = dma.hbm_to_vmem [thread:$0]  (!%p2113_p1), %s2150_s12, 512, %s2152_s23, %s2156_s2, %s1781_s1, %s1782_s26, %s1783_s4  }
  0xc2   : > { %425 = sbr.rel (%p2428_p7) target bundleno = 1676 (0x68c), region = 56  ;;  %p2429_p8 = scmp.eq.s32.totalorder (!%p2428_p7), %s1911_s28, 0 }
  0xc9   : > { %1701 = dma.done.wait (%p2429_p8), [#allocation9], 32   ;;  %p2430_p10 = pmov %p2429_p8 }
  0xca   : > { %s2191_s20 = sand.u32 1, %s1911_s28   ;;  %s433_s10 = sand.u32 1, %s1750_s21  }
  0xcb   : > { %1703 = vsyncadd (%p2430_p10), [#allocation9], 4294967264  ;;  %s2194_s14 = sshll.u32 %s433_s10, 1  ;;  %s432_s2 = scalar_lea.sflag [#allocation12], %s2191_s20 }
  0xcc   : > { %s435_s5 = scalar_lea.vmem [#allocation11], %s2194_s14  ;;  %p2431_p1 = scmp.ne.s32.totalorder %s2418_s17, 0 }
  0xce   : > { %1705 = dma.done.wait (%p2431_p1), %s432_s2, 32  }
  0xcf   : > { %1707 = vsyncadd (%p2431_p1), %s432_s2, 4294967264  ;;  %p2432_p9 = pmov %p2429_p8 }
  0xd0   : > { %p2433_p5 = pmov %p2429_p8 }
  0xd1   : > { %1709 = dma.done.wait (%p2432_p9), [#allocation12], 16  }
  0xd2   : > { %1711 = vsyncadd (%p2433_p5), [#allocation12], 4294967280  ;;  %p2434_p2 = pmov %p2433_p5 }
  0xd4   : > { %1713 = dma.done.wait (%p2434_p2), [#allocation15], 16   ;;  %p2435_p0 = pmov %p2434_p2 }
  0xd5   : > { %s450_s30 = sand.u32 1, %s1738_s18   ;;  %s449_s23 = scalar_lea.sflag [#allocation9], %s2191_s20 }
  0xd6   : > { %1715 = vsyncadd (%p2435_p0), [#allocation15], 4294967280  ;;  %s1168_s12 = sshll.u32 %s450_s30, 5  ;;  %p2436_p3 = scmp.ne.s32.totalorder %s2407_s29, 0 }
  0xd7   : > { %s2212_s17 = scalar_lea.vmem [#allocation16], %s1168_s12 }
  0xd8   : > { %1717 = dma.done.wait (%p2436_p3), %s449_s23, 512  }
  0xd9   : > { %1719 = vsyncadd (%p2436_p3), %s449_s23, 4294966784  ;;  %s2437_s7 = sld [smem:[#allocation29_spill]]  ;;  %s2218_s6 = sshll.u32 %s433_s10, 3 }
  0xda   : > { %p501_p4 = scmp.eq.s32.totalorder %s1762_s24, 0  ;;  %s495_s9 = scalar_lea.vmem [#allocation20], %s2218_s6 }
  0xdf   : > { %p502_p6 = scmp.eq.s32.totalorder %s2437_s7, 0 }
  0xe1   : > { %p503_p11 = pnand %p502_p6, %p501_p4 }
  0xe2   : > { %s2438_s1 = sld [smem:[#allocation37_spill]] (!%p503_p11)  ;;  %v1784_v1 = vmov (!%p503_p11), 0.0   ;;  %vm1785_vm0 = vmmov (!%p503_p11), 0   ;;  %s2439_s4 = sld [smem:[#allocation34_spill]] (!%p503_p11)  ;;  %vm513_vm1 = vcmask (!%p503_p11), 261120   ;;  %vm554_vm2 = vcmask (!%p503_p11), 64512  }
  0xe3   : > { %506 = sbr.rel (%p503_p11) target bundleno = 520 (0x208), region = 80  ;;  %532 = vst [vmem:[#allocation17] sm:$0x3] (!%p503_p11), %v1784_v1  ;;  %1202 = vmatprep.subr.mxu0 (!%p503_p11), %v1784_v1  ;;  %1204 = vmatprep.mubr.msk.f32.mxu0 (!%p503_p11), %vm1785_vm0, %v1784_v1  ;;  %s2440_s30 = sld [smem:[#allocation40_spill]] (!%p503_p11)  ;;  %v1170_v9 = vld [vmem:[#allocation13] ss:$0 sm:$0xff] (!%p503_p11) }
  0xe4   : > { %s2441_s7 = sld [smem:[#allocation39_spill]] (!%p503_p11)  ;;  %v544_v12 = vld [vmem:[#allocation8] sm:$0x3] (!%p503_p11)  ;;  %vm528_vm3 = vcmask (!%p503_p11), 7168   ;;  %v1786_v22 = vmov (!%p503_p11), -inf   ;;  %vm628_vm4 = vcmask (!%p503_p11), 58368  }
  0xe5   : > { %531 = vst.msk [vmem:[#allocation6] sm:$0xff] (!%p503_p11), %vm528_vm3, %v1784_v1  ;;  %530 = vst.msk [vmem:[#allocation5] sm:$0xff] (!%p503_p11), %vm528_vm3, %v1786_v22  ;;  %v1171_v26 = vld [vmem:[#allocation14] ss:$0 sm:$0xff] (!%p503_p11) }
  0xe8   : > { %v546_v0 = vld [vmem:[%s2438_s1] sm:$0xff] (!%p503_p11) }
  0xe9   : > { %v534_v2 = vld [vmem:[%s2439_s4] sm:$0x3] (!%p503_p11)  ;;  %1203 = vmatpush3.msra.mxu0 (!%p503_p11), %v546_v0 }
  0xea   : > { %v507_v3 = vld [vmem:[%s2440_s30] sm:$0xff]  ;;  %v535_v4 = vmul.f32 1.442695, %v534_v2 }
  0xeb   : > { %v517_v5 = vsel %vm513_vm1, %v507_v3, 0.0  ;;  %v509_v6 = vsub.f32 0.0, %v507_v3  ;;  %v508_v8 = vld [vmem:[%s2441_s7] sm:$0xff] }
  0xec   : > { %518 = vadd.xlane.f32.xlu0 %v517_v5  ;;  %1411 = vpow2.f32 %v535_v4  ;;  %v521_v10 = vmul.f32 %v508_v8, %v508_v8 }
  0xed   : > { %v510_v7 = vmul.f32 1.442695, %v509_v6 }
  0xef   : > { %1413 = vpow2.f32 %v510_v7 }
  0xf6   : > { %v1412_v11 = vpop.eup %1411 }
  0xf7   : > { %v543_v13 = vmul.f32 %v1412_v11, %v1170_v9 }
  0xf9   : > { %v1414_v14 = vpop.eup %1413  ;;  %v545_v15 = vadd.f32 %v544_v12, %v543_v13 }
  0xfa   : > { %v512_v16 = vmul.f32 -0.5, %v1414_v14  ;;  %v522_v17 = vmul.f32 %v1414_v14, %v521_v10  ;;  %v515_v18 = vmul.f32 %v1414_v14, %v508_v8 }
  0xfb   : > { %1205 = vmatmul.mubr.msk.f32.vlgmr.msra.gmra.mrb[0].mxu0 %vm554_vm2, %v545_v15 }
  0xfc   : > { %514 = vst.msk [vmem:[#allocation2] sm:$0xff] %vm513_vm1, %v512_v16  ;;  %v523_v19 = vsel %vm513_vm1, %v522_v17, 0.0  ;;  %516 = vst.msk [vmem:[#allocation3] sm:$0xff] %vm513_vm1, %v515_v18 }
  0xfd   : > { %524 = vadd.xlane.f32.xlu0 %v523_v19 }
 0x179   : > { %v519_v20 = vpop.xlane.xlu0 %518 }
 0x17a   : > { %v520_v21 = vadd.f32 58.812065, %v519_v20 }
 0x18a   : > { %v525_v23 = vpop.xlane.xlu0 %524 }
 0x18b   : > { %v526_v24 = vadd.f32 %v525_v23, %v520_v21 }
 0x18d   : > { %v527_v25 = vmul.f32 -0.5, %v526_v24 }
 0x18f   : > { %529 = vst.msk [vmem:[#allocation4] sm:$0xff] %vm528_vm3, %v527_v25 }
 0x1ce   : > { %v624_v27 = vpop.f32.mrb[0].mxu0 }
 0x1cf   : > { %v625_v28 = vadd.f32 %v1171_v26, %v624_v27  ;;  %v1206_v29 = vpop.f32.mrb[1].mxu0 }
 0x1d1   : > { %v629_v30 = vsel %vm628_vm4, %v625_v28, -inf }
 0x1d2   : > { %v630_v31 = vrot.slane %v629_v30, 4 }
 0x1d4   : > { %v631_v32 = vmax.f32 %v629_v30, %v630_v31 }
 0x1d6   : > { %v632_v33 = vrot.slane %v631_v32, 2 }
 0x1d8   : > { %v633_v34 = vmax.f32 %v631_v32, %v632_v33 }
 0x1da   : > { %v634_v35 = vrot.slane %v633_v34, 1 }
 0x1dc   : > { %v635_v36 = vmax.f32 %v633_v34, %v634_v35 }
 0x1de   : > { %v636_v37 = vsub.f32 %v625_v28, %v635_v36 }
 0x1e0   : > { %v637_v38 = vmul.f32 1.442695, %v636_v37 }
 0x1e2   : > { %1415 = vpow2.f32 %v637_v38 }
 0x1ec   : > { %v1416_v39 = vpop.eup %1415 }
 0x1ed   : > { %v639_v40 = vsel %vm628_vm4, %v1416_v39, 0.0 }
 0x1ee   : > { %v640_v41 = vrot.slane %v639_v40, 4 }
 0x1f0   : > { %v641_v42 = vadd.f32 %v640_v41, %v639_v40 }
 0x1f2   : > { %v642_v43 = vrot.slane %v641_v42, 2 }
 0x1f4   : > { %v643_v44 = vadd.f32 %v642_v43, %v641_v42 }
 0x1f6   : > { %v644_v45 = vrot.slane %v643_v44, 1 }
 0x1f8   : > { %v645_v46 = vadd.f32 %v644_v45, %v643_v44 }
 0x1fa   : > { %1417 = vrcp.f32 %v645_v46 }
 0x204   : > { %v1418_v47 = vpop.eup %1417 }
 0x205   : > { %v647_v48 = vmul.f32 %v1418_v47, %v1416_v39 }
 0x207   : > { %648 = vst.msk [vmem:[#allocation18] sm:$0x3] %vm628_vm4, %v647_v48 }
 0x208 PF: > { %p1173_p12 = scmp.ne.s32.totalorder %s1762_s24, 0 }
 0x209   : > { %v652_v49 = vld [vmem:[%s2212_s17] sm:$0xff] (!%p1173_p12)  ;;  %v653_v50 = vld [vmem:[%s2212_s17 + $0x8] sm:$0xff] (!%p1173_p12)  ;;  %v654_v51 = vld [vmem:[%s2212_s17 + $0x10] sm:$0xff] (!%p1173_p12)  ;;  %v1787_v52 = vmov (!%p1173_p12), 0.0|0.0   ;;  %vm1788_vm5 = vmmov (!%p1173_p12), 0   ;;  %v1789_v59 = vmov (!%p1173_p12), 0.0  }
 0x20a   : > { %651 = sbr.rel (%p1173_p12) target bundleno = 1181 (0x49d), region = 84  ;;  %1234 = vmatprep.subr.bf16.mxu0 (!%p1173_p12), %v1787_v52  ;;  %v1235_v53 = vpack.c.bf16 (!%p1173_p12), %v653_v50, %v652_v49  ;;  %1240 = vmatprep.subr.bf16.mxu1 (!%p1173_p12), %v1787_v52  ;;  %v657_v54 = vmul.f32 (!%p1173_p12), %v652_v49, %v652_v49  ;;  %v658_v55 = vmul.f32 (!%p1173_p12), %v653_v50, %v653_v50  ;;  %v655_v56 = vld [vmem:[%s2212_s17 + $0x18] sm:$0xff] (!%p1173_p12)  ;;  %v809_v60 = vld [vmem:[#allocation4] sm:$0xff] (!%p1173_p12)  ;;  %v1790_v63 = vmov (!%p1173_p12), 0   ;;  %s2442_s11 = sld [smem:[#allocation29_spill]] (!%p1173_p12)  ;;  %v661_v1 = vld [vmem:[#allocation3] sm:$0xff] (!%p1173_p12) }
 0x20b   : > { %v659_v57 = vmul.f32 (!%p1173_p12), %v654_v51, %v654_v51  ;;  %v660_v58 = vmul.f32 (!%p1173_p12), %v655_v56, %v655_v56  ;;  %1215 = vmatprep.mubr.msk.f32.mxu0 (!%p1173_p12), %vm1788_vm5, %v1789_v59  ;;  %1226 = vmatprep.mubr.msk.f32.mxu1 (!%p1173_p12), %vm1788_vm5, %v1789_v59  ;;  %v1238_v62 = vpack.c.bf16 (!%p1173_p12), %v655_v56, %v654_v51  ;;  %vm662_vm6 = vcmask (!%p1173_p12), 261120   ;;  %v656_v2 = vld [vmem:[#allocation2] sm:$0xff] (!%p1173_p12)  ;;  %v819_v10 = vld [vmem:[#allocation5] sm:$0xff] (!%p1173_p12) }
 0x20c   : > { %1236 = vmatpush3.bf16.msra.mxu0 (!%p1173_p12), %v1235_v53  ;;  %v1241_v61 = vpack.c.bf16 (!%p1173_p12), %v658_v55, %v657_v54  ;;  %1419 = vset.pattern.permute.xlu0 (!%p1173_p12), %v1790_v63  ;;  %vm839_vm7 = vcmask (!%p1173_p12), 7168   ;;  %v823_v20 = vld [vmem:[#allocation6] sm:$0xff] (!%p1173_p12) }
 0x20d   : > { %1237 = vmatprep.subr.bf16.mxu0 (!%p1173_p12), %v1787_v52  ;;  %812 = vperm.xlu0 (!%p1173_p12), %1419, %v809_v60   ;;  %v1244_v0 = vpack.c.bf16 (!%p1173_p12), %v660_v58, %v659_v57 }
 0x20e   : > { %1242 = vmatpush3.bf16.msra.mxu1 (!%p1173_p12), %v1241_v61  ;;  %1420 = vset.pattern.permute.xlu1 (!%p1173_p12), %v1790_v63 }
 0x20f   : > { %1243 = vmatprep.subr.bf16.mxu1 (!%p1173_p12), %v1787_v52 }
 0x210   : > { %1239 = vmatpush3.bf16.msra.mxu0 (!%p1173_p12), %v1238_v62  ;;  %s1176_s17 = sshll.u32 (!%p1173_p12), %s2442_s11, 3 }
 0x211   : > { %s817_s16 = scalar_lea.vmem [#allocation7], %s1176_s17 }
 0x212   : > { %1245 = vmatpush3.bf16.msra.mxu1 %v1244_v0 }
 0x213   : > { %1216 = vmatmul.mubr.msk.f32.vlgmr.msra.gmra.mrb[0].mxu0 %vm662_vm6, %v661_v1 }
 0x215   : > { %1227 = vmatmul.mubr.msk.f32.vlgmr.msra.gmra.mrb[0].mxu1 %vm662_vm6, %v656_v2 }
 0x28c   : > { %v813_v6 = vpop.permute.xlu0 %812 }
 0x2e6   : > { %v732_v3 = vpop.f32.mrb[0].mxu0 }
 0x2e7   : > { %v1217_v4 = vpop.f32.mrb[1].mxu0 }
 0x2e8   : > { %v805_v5 = vpop.f32.mrb[0].mxu1 }
 0x2e9   : > { %v806_v7 = vadd.f32 %v805_v5, %v732_v3  ;;  %v1228_v8 = vpop.f32.mrb[1].mxu1 }
 0x2eb   : > { %v815_v9 = vadd.f32 %v813_v6, %v806_v7 }
 0x2ed   : > { %818 = vst [vmem:[%s817_s16] sm:$0xff] %v815_v9  ;;  %820 = vmax.xlane.f32.xlu0 %v815_v9 }
 0x37a   : > { %v821_v11 = vpop.xlane.xlu0 %820 }
 0x37b   : > { %v822_v12 = vmax.f32 %v819_v10, %v821_v11 }
 0x37d   : > { %v824_v13 = vsub.f32 %v819_v10, %v822_v12  ;;  %841 = vst.msk [vmem:[#allocation5] sm:$0xff] %vm839_vm7, %v822_v12  ;;  %830 = vperm.xlu1 %1420, %v822_v12  }
 0x37f   : > { %v825_v18 = vmul.f32 1.442695, %v824_v13 }
 0x3fc   : > { %v831_v14 = vpop.permute.xlu1 %830 }
 0x3fd   : > { %v833_v15 = vsub.f32 %v815_v9, %v831_v14 }
 0x3ff   : > { %v834_v16 = vmul.f32 1.442695, %v833_v15 }
 0x401   : > { %1421 = vpow2.f32 %v834_v16 }
 0x402   : > { %1423 = vpow2.f32 %v825_v18 }
 0x40b   : > { %v1422_v17 = vpop.eup %1421 }
 0x40c   : > { %836 = vadd.xlane.f32.xlu1 %v1422_v17  ;;  %v1424_v19 = vpop.eup %1423 }
 0x40d   : > { %v827_v21 = vmul.f32 %v1424_v19, %v823_v20 }
 0x499   : > { %v837_v22 = vpop.xlane.xlu1 %836 }
 0x49a   : > { %v838_v23 = vadd.f32 %v837_v22, %v827_v21 }
 0x49c   : > { %840 = vst.msk [vmem:[#allocation6] sm:$0xff] %vm839_vm7, %v838_v23 }
 0x49d PF: > { %p842_p13 = scmp.eq.s32.totalorder %s1762_s24, 1 }
 0x49f   : > { %p843_p7 = pnand %p842_p13, %p502_p6 }
 0x4a0   : > { %vm849_vm8 = vcmask (!%p843_p7), 7168  }
 0x4a1   : > { %846 = sbr.rel (%p843_p7) target bundleno = 1200 (0x4b0), region = 88 }
 0x4a3   : > { %v847_v24 = vld [vmem:[#allocation6] sm:$0xff] (!%p843_p7) }
 0x4a4   : > { %1425 = vrcp.f32 (!%p843_p7), %v847_v24 }
 0x4ae   : > { %v1426_v25 = vpop.eup %1425 }
 0x4af   : > { %850 = vst.msk [vmem:[#allocation6] sm:$0xff] %vm849_vm8, %v1426_v25 }
 0x4b0 PF: > { %p1177_p8 = scmp.ne.s32.totalorder %s1762_s24, 1 }
 0x4b1   : > { %v857_v26 = vld [vmem:[#allocation5] sm:$0xff] (!%p1177_p8)  ;;  %s2444_s29 = sld [smem:[#allocation29_spill]] (!%p1177_p8)  ;;  %v1791_v27 = vmov (!%p1177_p8), 0   ;;  %v1792_v29 = vmov (!%p1177_p8), 0.0   ;;  %vm1793_vm9 = vmmov (!%p1177_p8), 0   ;;  %vm876_vm10 = vcmask (!%p1177_p8), 64512  }
 0x4b2   : > { %853 = sbr.rel (%p1177_p8) target bundleno = 1583 (0x62f), region = 92  ;;  %1427 = vset.pattern.permute.xlu0 (!%p1177_p8), %v1791_v27  ;;  %1229 = vmatprep.subr.mxu0 (!%p1177_p8), %v1792_v29  ;;  %v875_v38 = vld [vmem:[#allocation18] sm:$0x3] (!%p1177_p8)  ;;  %v952_v43 = vld [vmem:[%s435_s5] sm:$0x3] (!%p1177_p8) }
 0x4b3   : > { %860 = vperm.xlu0 (!%p1177_p8), %1427, %v857_v26   ;;  %1231 = vmatprep.mubr.msk.f32.mxu0 (!%p1177_p8), %vm1793_vm9, %v1792_v29  ;;  %v954_v45 = vld [vmem:[#allocation17] sm:$0x3] (!%p1177_p8) }
 0x4b6   : > { %v866_v28 = vld [vmem:[#allocation6] sm:$0xff] (!%p1177_p8) }
 0x4b7   : > { %869 = vperm.xlu0 (!%p1177_p8), %1427, %v866_v28   ;;  %s1178_s26 = sshll.u32 (!%p1177_p8), %s2444_s29, 3 }
 0x4b8   : > { %s855_s4 = scalar_lea.vmem (!%p1177_p8), [#allocation7], %s1178_s26 }
 0x4b9   : > { %v856_v30 = vld [vmem:[%s855_s4] sm:$0xff] }
 0x532   : > { %v861_v31 = vpop.permute.xlu0 %860 }
 0x533   : > { %v863_v32 = vsub.f32 %v856_v30, %v861_v31 }
 0x535   : > { %v864_v33 = vmul.f32 1.442695, %v863_v32 }
 0x536   : > { %v870_v35 = vpop.permute.xlu0 %869 }
 0x537   : > { %1428 = vpow2.f32 %v864_v33 }
 0x541   : > { %v1429_v34 = vpop.eup %1428 }
 0x542   : > { %v872_v36 = vmul.f32 %v1429_v34, %v870_v35 }
 0x544   : > { %v873_v37 = vadd.f32 9.9999994e-11, %v872_v36 }
 0x546   : > { %874 = vst [vmem:[%s495_s9] sm:$0xff] %v873_v37  ;;  %1230 = vmatpush3.msra.mxu0 %v873_v37 }
 0x547   : > { %1232 = vmatmul.mubr.msk.f32.vlgmr.msra.gmra.mrb[0].mxu0 %vm876_vm10, %v875_v38 }
 0x61a   : > { %v946_v39 = vpop.f32.mrb[0].mxu0 }
 0x61b   : > { %v947_v40 = vadd.f32 1e-10, %v946_v39  ;;  %v1233_v41 = vpop.f32.mrb[1].mxu0 }
 0x61d   : > { %1430 = vlog2.f32 %v947_v40 }
 0x627   : > { %v1431_v42 = vpop.eup %1430 }
 0x628   : > { %v951_v44 = vmul.f32 0.6931472, %v1431_v42 }
 0x62a   : > { %v953_v46 = vmul.f32 %v952_v43, %v951_v44 }
 0x62c   : > { %v955_v47 = vadd.f32 %v954_v45, %v953_v46 }
 0x62e   : > { %956 = vst [vmem:[#allocation17] sm:$0x3] %v955_v47 }
 0x62f PF: > { %s1794_s10 = smov [#allocation17]   ;;  %s1795_s30 = smov [#allocation18]  }
 0x630   : > { %s969_s2 = sshll.u32 %s1794_s10, 4  ;;  %s980_s12 = sshll.u32 %s1795_s30, 4  ;;  %s970_s2 = int_to_ptr.vmem [resolvable:$true] %s969_s2  ;;  %s981_s12 = int_to_ptr.vmem [resolvable:$true] %s980_s12 }
 0x631   : > { %s1576_s23 = scalar_lea.vmem %s970_s2, 32  ;;  %p2445_p1 = scmp.eq.s32.totalorder %s1911_s28, 3 }
 0x632   : > { %p1577_p10 = scmp.ne.s32.totalorder %s970_s2, %s1576_s23  ;;  %p1583_p2 = scmp.lt.s32.totalorder %s970_s2, %s970_s2 }
 0x633   : > { %p1584_p0 = scmp.lt.s32.totalorder %s1576_s23, %s1576_s23 }
 0x634   : > { %p1578_p9 = pnand %p1577_p10, %p2445_p1 }
 0x635   : > { %p1585_p3 = por %p1584_p0, %p1583_p2 }
 0x636   : > { %p1579_p5 = pneg %p1578_p9 }
 0x638   : > { %p1586_p4 = pnand %p1585_p3, %p1579_p5 }
 0x63a   : > { %1589 = shalt.err (!%p1586_p4)
}
 0x63b   : > { %s2446_s7 = sld [smem:[#allocation41_spill]]  ;;  %p2447_p11 = pmov %p2445_p1 }
 0x641   : > { %s1590_s11 = scalar_lea.hbm %s2446_s7, 32 }
 0x642   : > { %p1591_p6 = scmp.ne.s32.totalorder %s2446_s7, %s1590_s11  ;;  %p1596_p7 = scmp.lt.u32.totalorder %s1590_s11, %s2446_s7 }
 0x644   : > { %p1592_p12 = pnand %p1591_p6, %p2447_p11 }
 0x646   : > { %p1593_p13 = pneg %p1592_p12 }
 0x648   : > { %p1598_p8 = pnand %p1596_p7, %p1593_p13 }
 0x64a   : > { %1601 = shalt.err (!%p1598_p8)
}
 0x64b   : > { %p2448_p10 = pmov %p2445_p1  ;;  %s1602_s10 = scalar_lea.vmem %s981_s12, 32 }
 0x64c   : > { %p1603_p1 = scmp.ne.s32.totalorder %s981_s12, %s1602_s10  ;;  %p1609_p0 = scmp.lt.s32.totalorder %s981_s12, %s981_s12 }
 0x64d   : > { %1263 = dma.vmem_to_hbm [thread:$0]  (%p2448_p10), %s970_s2, 32, %s2446_s7, [#allocation10]  }
 0x64e   : > { %p2449_p9 = pmov %p2448_p10  ;;  %p1610_p3 = scmp.lt.s32.totalorder %s1602_s10, %s1602_s10 }
 0x650   : > { %p1604_p5 = pnand %p1603_p1, %p2449_p9  ;;  %p1611_p4 = por %p1610_p3, %p1609_p0 }
 0x652   : > { %p1605_p2 = pneg %p1604_p5 }
 0x654   : > { %p1612_p6 = pnand %p1611_p4, %p1605_p2 }
 0x656   : > { %1615 = shalt.err (!%p1612_p6)
}
 0x657   : > { %s2450_s14 = sld [smem:[#allocation42_spill]]  ;;  %p2451_p12 = pmov %p2449_p9 }
 0x65d   : > { %s1616_s5 = scalar_lea.hbm %s2450_s14, 32 }
 0x65e   : > { %p1617_p11 = scmp.ne.s32.totalorder %s2450_s14, %s1616_s5  ;;  %p1622_p8 = scmp.lt.u32.totalorder %s1616_s5, %s2450_s14 }
 0x660   : > { %p1618_p13 = pnand %p1617_p11, %p2451_p12 }
 0x662   : > { %p1619_p7 = pneg %p1618_p13 }
 0x664   : > { %p1624_p10 = pnand %p1622_p8, %p1619_p7 }
 0x666   : > { %1627 = shalt.err (!%p1624_p10)
}
 0x667   : > { %p2452_p1 = pmov %p2449_p9  ;;  %s2453_s26 = sld [smem:[#allocation29_spill]] }
 0x668   : > { %s994_s10 = sshll.u32 %s495_s9, 4  ;;  %s2454_s11 = sld [smem:[#allocation43_spill]]  ;;  %s2301_s10 = int_to_ptr.vmem [resolvable:$true] %s994_s10 }
 0x669   : > { %1265 = dma.vmem_to_hbm [thread:$0]  (%p2452_p1), %s981_s12, 32, %s2450_s14, [#allocation19]  }
 0x66a   : > { %s958_s2 = scalar_lea.sflag [#allocation10], %s2191_s20  ;;  %s1628_s16 = scalar_lea.vmem %s2301_s10, 128 }
 0x66b   : > { %p1629_p9 = scmp.ne.s32.totalorder %s2301_s10, %s1628_s16  ;;  %p2455_p5 = scmp.ne.s32.totalorder %s2421_s13, 0 }
 0x66c   : > { %s1796_s12 = smov [#allocation20]  }
 0x66d   : > { %s987_s4 = smul.u32 %s2453_s26, %s1762_s24  ;;  %p1630_p2 = pnand %p1629_p9, %p2455_p5 }
 0x66e   : > { %s1632_s24 = sshll.u32 %s1796_s12, 4  ;;  %s1633_s24 = int_to_ptr.vmem [resolvable:$false] %s1632_s24 }
 0x66f   : > { %s1183_s30 = sshll.u32 %s987_s4, 7  ;;  %p1631_p0 = pneg %p1630_p2 }
 0x670   : > { %s992_s17 = scalar_lea.hbm %s2454_s11, %s1183_s30  ;;  %s1634_s6 = scalar_lea.vmem %s1633_s24, 256 }
 0x671   : > { %p1635_p3 = scmp.lt.s32.totalorder %s2301_s10, %s1633_s24  ;;  %p1636_p4 = scmp.lt.s32.totalorder %s1634_s6, %s1628_s16 }
 0x673   : > { %p1637_p6 = por %p1636_p4, %p1635_p3 }
 0x675   : > { %p1638_p11 = pnand %p1637_p6, %p1631_p0 }
 0x677   : > { %1641 = shalt.err (!%p1638_p11)
}
 0x678   : > { %s1642_s9 = scalar_lea.hbm %s992_s17, 128  ;;  %s1646_s29 = scalar_lea.hbm %s2454_s11, 256 }
 0x679   : > { %p1643_p12 = scmp.ne.s32.totalorder %s992_s17, %s1642_s9  ;;  %p1647_p8 = scmp.lt.u32.totalorder %s992_s17, %s2454_s11 }
 0x67a   : > { %p1648_p10 = scmp.lt.u32.totalorder %s1646_s29, %s1642_s9  ;;  %p1650_p9 = scmp.lt.u32.totalorder %s1642_s9, %s992_s17 }
 0x67b   : > { %p1644_p13 = pnand %p1643_p12, %p2455_p5 }
 0x67c   : > { %p1649_p1 = por %p1648_p10, %p1647_p8 }
 0x67d   : > { %p1645_p7 = pneg %p1644_p13 }
 0x67e   : > { %p1651_p2 = por %p1650_p9, %p1649_p1 }
 0x680   : > { %p1652_p0 = pnand %p1651_p2, %p1645_p7 }
 0x682   : > { %1655 = shalt.err (!%p1652_p0)
}
 0x683   : > { %1266 = dma.vmem_to_hbm [thread:$0]  (%p2455_p5), %s2301_s10, 128, %s992_s17, %s958_s2  }
 0x684   : > { %p2456_p3 = scmp.eq.s32.totalorder %s1911_s28, 3 }
 0x686   : > { %1721 = dma.done.wait (%p2456_p3), [#allocation10], 32   ;;  %p2457_p4 = pmov %p2456_p3 }
 0x687   : > { %p2458_p6 = pmov %p2456_p3 }
 0x688   : > { %1723 = vsyncadd (%p2457_p4), [#allocation10], 4294967264 }
 0x689   : > { %1725 = dma.done.wait (%p2458_p6), [#allocation19], 32   ;;  %p2459_p11 = pmov %p2456_p3 }
 0x68b   : > { %1727 = vsyncadd (%p2459_p11), [#allocation19], 4294967264 }
 0x68c PF: > { %p1304_p12 = scmp.ge.s32.totalorder %s1774_s27, 2  ;;  %s2460_s13 = sadd.s32 4294967294, %s1774_s27  }
 0x68d   : > { %s1014_s30 = sand.u32 1, %s2460_s13   ;;  %p2461_p13 = scmp.ne.s32.totalorder %s2423_s3, 0 }
 0x68e   : > { %s1015_s10 = scalar_lea.sflag [#allocation10], %s1014_s30 }
 0x68f   : > { %p1290_p5 = pnand %p1304_p12, %p2461_p13 }
 0x691   : > { %1729 = dma.done.wait (!%p1290_p5), %s1015_s10, 128  }
 0x692   : > { %1731 = vsyncadd (!%p1290_p5), %s1015_s10, 4294967168  ;;  %s29_s27 = sadd.s32 1, %s1774_s27   ;;  %s2462_s24 = sld [smem:[#allocation30_spill]] }
 0x693   : > { %p26_p7 = scmp.ge.s32.totalorder %s29_s27, 6   ;;  %s2463_s28 = sld [smem:[#allocation31_spill]] }
 0x694   : > { %s2464_s26 = sld [smem:[#allocation32_spill]]  ;;  %s2465_s17 = smov %s1738_s18 }
 0x695   : > { %s2466_s18 = smov %s1742_s19  ;;  %s2467_s19 = smov %s2084_s0 }
 0x696   : > { %s2468_s20 = smov %s1750_s21  ;;  %s2469_s21 = smov %s1754_s22 }
 0x697   : > { %s2470_s22 = smov %s2064_s15  ;;  %s2471_s23 = smov %s1766_s25 }
 0x698   :  { %28 = sbr.rel (!%p26_p7) target bundleno = 23 (0x17), region = 158 }
 0x699   : > { %s2472_s25 = smov %s2463_s28 }
 0x69f   :  { %1020 = vsyncpa [#allocation9], 1 }
 0x6a0   :  { %1022 = vsyncpa [#allocation9 + $0x1], 1 }
 0x6a1   :  { %1023 = vsyncpa [#allocation12], 1 }
 0x6a2   :  { %1025 = vsyncpa [#allocation12 + $0x1], 1 }
 0x6a3   :  { %1026 = vsyncpa [#allocation15], 1 }
 0x6a4   :  { %1027 = vsyncpa [#allocation10], 1 }
 0x6a5   :  { %1029 = vsyncpa [#allocation10 + $0x1], 1 }
 0x6a6   :  { %1030 = vsyncpa [#allocation19], 1 }

</bundles_post_ra>
